<compile_context>
chip_gen: v6e
topology: v6e:2x2x1
jax: 0.10.0
libtpu: 0.0.40
codegen_flags: <defaults>
</compile_context>

<pallas_src>
import functools

import jax
import jax.numpy as jnp
from jax.experimental import pallas as pl
from jax.experimental.pallas import tpu as pltpu


def _round_up(x, m):
    return ((x + m - 1) // m) * m


def _cdiv(a, b):
    return (a + b - 1) // b


def _bf16_eup_available():
    """v6e / v7x have a bf16 VPU/EUP datapath; v5e (and older) do not."""
    try:
        kind = jax.devices()[0].device_kind.lower()
    except Exception:
        return False
    return not any(tag in kind for tag in ("v2", "v3", "v4", "v5"))


def attention_kernel(dec_ref, enc_ref, w2t_ref, vw_ref, ctx_ref, aw_ref,
                     *, seq_len, act_dtype):
    """One batch tile of additive attention.

    dec_ref : (bt, 1, Dd)  f32   -- W1 @ h + b1 + b2 (precomputed, padded)
    enc_ref : (bt, S, De)  f32   -- zero-padded encoder outputs
    w2t_ref : (De, Dd)     bf16  -- W2^T (zero-padded)
    vw_ref  : (1, 1, Dd)   f32   -- v weight row (zero-padded)
    ctx_ref : (bt, De)     f32
    aw_ref  : (bt, S)      f32
    """
    bt, s_pad, de_pad = enc_ref.shape
    dd_pad = w2t_ref.shape[1]

    enc = enc_ref[...]                                        # (bt, S, De) f32

    # Encoder projection: one MXU-shaped matmul (bf16 inputs, f32 accumulate).
    enc_flat = enc.astype(jnp.bfloat16).reshape(bt * s_pad, de_pad)
    enc_proj = jnp.dot(enc_flat, w2t_ref[...],
                       preferred_element_type=jnp.float32)    # (bt*S, Dd) f32
    enc_proj = enc_proj.reshape(bt, s_pad, dd_pad)

    # dec_ref already holds W1 @ h + b1 + b2; broadcast over the sequence.
    # bf16 tanh on v6e/v7x (native bf16 EUP), f32 on v5e.
    attn_in = jnp.tanh((enc_proj + dec_ref[...]).astype(act_dtype))

    # scores[b, s] = v . attn_in[b, s, :]  -- VPU multiply + lane-axis reduce
    # (padded Dd columns of vw are zero, so they contribute nothing).
    scores = jnp.sum(attn_in * vw_ref[...], axis=-1)          # (bt, S) f32
    # v-bias is a uniform shift -> cancels in the softmax, omitted.

    # Mask zero-padded sequence positions before the softmax.
    if seq_len < s_pad:
        pos = jax.lax.broadcasted_iota(jnp.int32, (bt, s_pad), 1)
        scores = jnp.where(pos < seq_len, scores, -1e30)

    # Numerically stable softmax along the lane (sequence) axis, in f32.
    m = jnp.max(scores, axis=-1, keepdims=True)
    e = jnp.exp(scores - m)
    denom = jnp.sum(e, axis=-1, keepdims=True)
    w = e * pl.reciprocal(denom, approx=True)                 # (bt, S)
    aw_ref[...] = w

    # context[b, :] = sum_s w[b, s] * enc[b, s, :]  -- uses the f32 encoder
    # copy, VPU multiply + sublane(S)-axis reduce (no per-batch MXU matmuls).
    ctx_ref[...] = jnp.sum(w[:, :, None] * enc, axis=1)       # (bt, De) f32


def attention(decoder_hidden, encoder_outputs, params):
    """params use the PyTorch nn.Linear (out, in) weight convention:
       W1 (Dd, Dd), b1 (Dd,), W2 (Dd, De), b2 (Dd,), vW (1, Dd), vb (1,)."""
    f32, bf16 = jnp.float32, jnp.bfloat16
    B, Dd = decoder_hidden.shape
    _, S, De = encoder_outputs.shape

    dd_p = _round_up(Dd, 128)
    de_p = _round_up(De, 128)
    s_p = _round_up(S, 128)

    # ---- batch-tile selection from the real VMEM footprint ------------------
    # per-batch-row bytes resident in VMEM:
    #   enc block (f32, double-buffered)        2 * s_p * de_p * 4
    #   in-kernel bf16 copy of enc              s_p * de_p * 2
    #   w*enc product for the context sum       s_p * de_p * 4
    #   enc_proj + attn_in intermediates        2 * s_p * dd_p * 4
    #   outputs (double-buffered)               2 * (s_p + de_p) * 4
    per_row = (2 * s_p * de_p * 4 + s_p * de_p * 2 + s_p * de_p * 4
               + 2 * s_p * dd_p * 4 + 2 * (s_p + de_p) * 4)
    fixed = 2 * (de_p * dd_p * 2 + dd_p * 4)       # double-buffered W2^T + vw
    budget = 36 * 1024 * 1024                      # fits v7x's 64 MiB VMEM w/ headroom
    bt_cap = max(8, ((budget - fixed) // per_row) // 8 * 8)
    # Keep >= 2 grid steps (when B allows it) so v7x's two TensorCores share work.
    bt = int(min(128, bt_cap, _round_up(_cdiv(B, 2), 8)))
    if B <= bt:
        bt = B                                     # one exact full-batch block
    grid_b = _cdiv(B, bt)
    # TODO(synk): for very long sequences, add an inner "arbitrary" grid axis
    # over S chunks with an online softmax instead of holding all of S in VMEM.

    # The W1 projection is tiny and batch-only: let XLA do it in the wrapper,
    # folding in b1 and b2 (both constant over the sequence).
    # TODO(synk): when decoding step-by-step over fixed encoder_outputs, hoist
    # enc @ W2^T (+ b2) out of the per-step call entirely and pass it in.
    dec_comb = (decoder_hidden.astype(f32) @ params["W1"].astype(f32).T
                + params["b1"].astype(f32) + params["b2"].astype(f32))
    if dd_p != Dd:
        dec_comb = jnp.pad(dec_comb, ((0, 0), (0, dd_p - Dd)))
    dec_comb = dec_comb[:, None, :]                            # (B, 1, dd_p)

    # Encoder outputs stay f32 (no extra HBM pass for a bf16 copy); pad the
    # trailing dims only when they are not already lane/sublane aligned.
    enc = encoder_outputs.astype(f32)
    if (s_p, de_p) != (S, De):
        enc = jnp.pad(enc, ((0, 0), (0, s_p - S), (0, de_p - De)))

    w2t = params["W2"].astype(f32).T
    if (de_p, dd_p) != (De, Dd):
        w2t = jnp.pad(w2t, ((0, de_p - De), (0, dd_p - Dd)))
    w2t = w2t.astype(bf16)

    vw = params["vW"].astype(f32)
    if dd_p != Dd:
        vw = jnp.pad(vw, ((0, 0), (0, dd_p - Dd)))
    vw = vw.reshape(1, 1, dd_p)
    # params["vb"] cancels in the softmax and never reaches either output.

    act_dtype = bf16 if _bf16_eup_available() else f32
    kernel = functools.partial(attention_kernel, seq_len=S, act_dtype=act_dtype)

    vmem_bytes = int((fixed + bt * per_row) * 1.5) + (4 << 20)
    vmem_bytes = max(32 << 20, min(vmem_bytes, 56 << 20))

    grid_spec = pltpu.PrefetchScalarGridSpec(
        num_scalar_prefetch=0,
        grid=(grid_b,),
        in_specs=[
            pl.BlockSpec((bt, 1, dd_p), lambda i: (i, 0, 0)),     # dec projection
            pl.BlockSpec((bt, s_p, de_p), lambda i: (i, 0, 0)),   # encoder tile (f32)
            pl.BlockSpec((de_p, dd_p), lambda i: (0, 0)),         # W2^T (bf16)
            pl.BlockSpec((1, 1, dd_p), lambda i: (0, 0, 0)),      # v weight (f32)
        ],
        out_specs=[
            pl.BlockSpec((bt, de_p), lambda i: (i, 0)),           # context
            pl.BlockSpec((bt, s_p), lambda i: (i, 0)),            # attn weights
        ],
    )

    ctx_p, aw_p = pl.pallas_call(
        kernel,
        out_shape=(
            jax.ShapeDtypeStruct((B, de_p), f32),
            jax.ShapeDtypeStruct((B, s_p), f32),
        ),
        grid_spec=grid_spec,
        compiler_params=pltpu.CompilerParams(
            dimension_semantics=("parallel",),
            vmem_limit_bytes=vmem_bytes),
    )(dec_comb, enc, w2t, vw)

    return ctx_p[:, :De], aw_p[:, :S]


def attention_ref(decoder_hidden, encoder_outputs, params):
    """Pure-JAX f32 reference replicating the PyTorch forward."""
    enc_proj = jnp.einsum("bse,de->bsd", encoder_outputs, params["W2"]) + params["b2"]
    dec_proj = (decoder_hidden @ params["W1"].T + params["b1"])[:, None, :]
    attn_input = jnp.tanh(dec_proj + enc_proj)
    scores = jnp.einsum("bsd,od->bso", attn_input, params["vW"])[..., 0] + params["vb"][0]
    attn_weights = jax.nn.softmax(scores, axis=1)
    context = jnp.einsum("bs,bse->be", attn_weights, encoder_outputs)
    return context, attn_weights


if __name__ == "__main__":
    B, S, Dd, De = 2, 8, 32, 32

    key = jax.random.PRNGKey(0)
    ks = jax.random.split(key, 8)
    params = {
        "W1": jax.random.normal(ks[0], (Dd, Dd), jnp.float32) * 0.1,
        "b1": jax.random.normal(ks[1], (Dd,), jnp.float32) * 0.1,
        "W2": jax.random.normal(ks[2], (Dd, De), jnp.float32) * 0.1,
        "b2": jax.random.normal(ks[3], (Dd,), jnp.float32) * 0.1,
        "vW": jax.random.normal(ks[4], (1, Dd), jnp.float32) * 0.1,
        "vb": jax.random.normal(ks[5], (1,), jnp.float32) * 0.1,
    }
    decoder_hidden = jax.random.normal(ks[6], (B, Dd), jnp.float32)
    encoder_outputs = jax.random.normal(ks[7], (B, S, De), jnp.float32)

    ctx, aw = attention(decoder_hidden, encoder_outputs, params)
    jax.block_until_ready((ctx, aw))

    ctx_want, aw_want = attention_ref(decoder_hidden, encoder_outputs, params)

    assert ctx.shape == (B, De) and aw.shape == (B, S), "output shape mismatch"
    # bf16 MXU inputs (f32 accumulation) -> compare with a bf16-appropriate tolerance
    assert jnp.allclose(aw, aw_want, atol=3e-2, rtol=3e-2), "attn_weights mismatch"
    assert jnp.allclose(ctx, ctx_want, atol=3e-2, rtol=3e-2), "context mismatch"
    assert jnp.allclose(aw.sum(axis=-1), 1.0, atol=1e-2), "attn_weights not normalized"

    print("KERNEL_OK")
</pallas_src>

<mosaic_0001>
module attributes {stable_mosaic.version = 11 : i64} {
  func.func @attention_kernel(%arg0: i32, %arg1: memref<2x1x128xf32, #tpu.memory_space<vmem>>, %arg2: memref<2x128x128xf32, #tpu.memory_space<vmem>>, %arg3: memref<128x128xbf16, #tpu.memory_space<vmem>>, %arg4: memref<1x1x128xf32, #tpu.memory_space<vmem>>, %arg5: memref<2x128xf32, #tpu.memory_space<vmem>>, %arg6: memref<2x128xf32, #tpu.memory_space<vmem>>) attributes {dimension_semantics = [#tpu.dimension_semantics<parallel>], iteration_bounds = array<i64: 1>, scalar_prefetch = 0 : i64, scratch_operands = 0 : i64, tpu.core_type = #tpu.core_type<tc>, window_params = [{transform_indices = @transform_0, window_bounds = array<i64: 2, 1, 128>}, {transform_indices = @transform_1, window_bounds = array<i64: 2, 128, 128>}, {pipeline_mode = #tpu.pipeline_mode<synchronous>, transform_indices = @transform_2, window_bounds = array<i64: 128, 128>}, {pipeline_mode = #tpu.pipeline_mode<synchronous>, transform_indices = @transform_3, window_bounds = array<i64: 1, 1, 128>}, {transform_indices = @transform_4, window_bounds = array<i64: 2, 128>}, {transform_indices = @transform_5, window_bounds = array<i64: 2, 128>}]} {
    %c0 = arith.constant 0 : index
    %c0_0 = arith.constant 0 : index
    %c0_1 = arith.constant 0 : index
    %0 = vector.load %arg2[%c0, %c0_0, %c0_1] : memref<2x128x128xf32, #tpu.memory_space<vmem>>, vector<2x128x128xf32>
    %1 = arith.truncf %0 : vector<2x128x128xf32> to vector<2x128x128xbf16>
    %2 = vector.shape_cast %1 : vector<2x128x128xbf16> to vector<256x128xbf16>
    %c0_2 = arith.constant 0 : index
    %c0_3 = arith.constant 0 : index
    %3 = vector.load %arg3[%c0_2, %c0_3] : memref<128x128xbf16, #tpu.memory_space<vmem>>, vector<128x128xbf16>
    %cst = arith.constant dense<0.000000e+00> : vector<256x128xf32>
    %4 = tpu.matmul %2, %3, %cst {dimension_numbers = #tpu.dot_dimension_numbers<[1], [0], [0], [1], [0, 0, 1, 1], [], []>} : vector<256x128xbf16>, vector<128x128xbf16>, vector<256x128xf32> -> vector<256x128xf32>
    %5 = vector.shape_cast %4 : vector<256x128xf32> to vector<2x128x128xf32>
    %c0_4 = arith.constant 0 : index
    %c0_5 = arith.constant 0 : index
    %c0_6 = arith.constant 0 : index
    %6 = vector.load %arg1[%c0_4, %c0_5, %c0_6] : memref<2x1x128xf32, #tpu.memory_space<vmem>>, vector<2x1x128xf32>
    %7 = vector.broadcast %6 : vector<2x1x128xf32> to vector<2x128x128xf32>
    %8 = arith.addf %5, %7 : vector<2x128x128xf32>
    %9 = arith.truncf %8 : vector<2x128x128xf32> to vector<2x128x128xbf16>
    %10 = math.tanh %9 : vector<2x128x128xbf16>
    %c0_7 = arith.constant 0 : index
    %c0_8 = arith.constant 0 : index
    %c0_9 = arith.constant 0 : index
    %11 = vector.load %arg4[%c0_7, %c0_8, %c0_9] : memref<1x1x128xf32, #tpu.memory_space<vmem>>, vector<1x1x128xf32>
    %12 = arith.extf %10 : vector<2x128x128xbf16> to vector<2x128x128xf32>
    %13 = vector.broadcast %11 : vector<1x1x128xf32> to vector<2x128x128xf32>
    %14 = arith.mulf %12, %13 : vector<2x128x128xf32>
    %cst_10 = arith.constant dense<0.000000e+00> : vector<2x128xf32>
    %15 = vector.multi_reduction <add>, %14, %cst_10 [2] : vector<2x128x128xf32> to vector<2x128xf32>
    %16 = tpu.iota {dimensions = array<i32: 1>} : vector<2x128xi32>
    %c8_i32 = arith.constant 8 : i32
    %17 = vector.broadcast %c8_i32 : i32 to vector<2x128xi32>
    %18 = arith.cmpi slt, %16, %17 : vector<2x128xi32>
    %cst_11 = arith.constant -1.000000e+30 : f32
    %19 = vector.broadcast %cst_11 : f32 to vector<2x128xf32>
    %20 = arith.select %18, %15, %19 : vector<2x128xi1>, vector<2x128xf32>
    %cst_12 = arith.constant dense<0xFF800000> : vector<2xf32>
    %21 = vector.multi_reduction <maximumf>, %20, %cst_12 [1] : vector<2x128xf32> to vector<2xf32>
    %22 = vector.shape_cast %21 : vector<2xf32> to vector<2x1xf32>
    %23 = vector.broadcast %22 : vector<2x1xf32> to vector<2x128xf32>
    %24 = arith.subf %20, %23 : vector<2x128xf32>
    %25 = math.exp %24 : vector<2x128xf32>
    %cst_13 = arith.constant dense<0.000000e+00> : vector<2xf32>
    %26 = vector.multi_reduction <add>, %25, %cst_13 [1] : vector<2x128xf32> to vector<2xf32>
    %27 = vector.shape_cast %26 : vector<2xf32> to vector<2x1xf32>
    %28 = tpu.reciprocal %27 {approx = true} : vector<2x1xf32> -> vector<2x1xf32>
    %29 = vector.broadcast %28 : vector<2x1xf32> to vector<2x128xf32>
    %30 = arith.mulf %25, %29 : vector<2x128xf32>
    %c0_14 = arith.constant 0 : index
    %c0_15 = arith.constant 0 : index
    %31 = vector.load %arg6[%c0_14, %c0_15] : memref<2x128xf32, #tpu.memory_space<vmem>>, vector<2x128xf32>
    tpu.vector_store %arg6[%c0_14, %c0_15], %30 {strides = array<i32>} : memref<2x128xf32, #tpu.memory_space<vmem>>, vector<2x128xf32>,
    %32 = vector.shape_cast %30 : vector<2x128xf32> to vector<2x128x1xf32>
    %33 = vector.broadcast %32 : vector<2x128x1xf32> to vector<2x128x128xf32>
    %34 = arith.mulf %33, %0 : vector<2x128x128xf32>
    %cst_16 = arith.constant dense<0.000000e+00> : vector<2x128xf32>
    %35 = vector.multi_reduction <add>, %34, %cst_16 [1] : vector<2x128x128xf32> to vector<2x128xf32>
    %c0_17 = arith.constant 0 : index
    %c0_18 = arith.constant 0 : index
    %36 = vector.load %arg5[%c0_17, %c0_18] : memref<2x128xf32, #tpu.memory_space<vmem>>, vector<2x128xf32>
    tpu.vector_store %arg5[%c0_17, %c0_18], %35 {strides = array<i32>} : memref<2x128xf32, #tpu.memory_space<vmem>>, vector<2x128xf32>,
    return
  }
  func.func @transform_0(%arg0: i32) -> (i32, i32, i32) {
    %c0_i32 = arith.constant 0 : i32
    %c0_i32_0 = arith.constant 0 : i32
    %c0_i32_1 = arith.constant 0 : i32
    return %arg0, %c0_i32, %c0_i32_0 : i32, i32, i32
  }
  func.func @transform_1(%arg0: i32) -> (i32, i32, i32) {
    %c0_i32 = arith.constant 0 : i32
    %c0_i32_0 = arith.constant 0 : i32
    %c0_i32_1 = arith.constant 0 : i32
    return %arg0, %c0_i32, %c0_i32_0 : i32, i32, i32
  }
  func.func @transform_2(%arg0: i32) -> (i32, i32) {
    %c0_i32 = arith.constant 0 : i32
    %c0_i32_0 = arith.constant 0 : i32
    %c0_i32_1 = arith.constant 0 : i32
    return %c0_i32, %c0_i32_0 : i32, i32
  }
  func.func @transform_3(%arg0: i32) -> (i32, i32, i32) {
    %c0_i32 = arith.constant 0 : i32
    %c0_i32_0 = arith.constant 0 : i32
    %c0_i32_1 = arith.constant 0 : i32
    %c0_i32_2 = arith.constant 0 : i32
    return %c0_i32, %c0_i32_0, %c0_i32_1 : i32, i32, i32
  }
  func.func @transform_4(%arg0: i32) -> (i32, i32) {
    %c0_i32 = arith.constant 0 : i32
    %c0_i32_0 = arith.constant 0 : i32
    return %arg0, %c0_i32 : i32, i32
  }
  func.func @transform_5(%arg0: i32) -> (i32, i32) {
    %c0_i32 = arith.constant 0 : i32
    %c0_i32_0 = arith.constant 0 : i32
    return %arg0, %c0_i32 : i32, i32
  }
}

</mosaic_0001>

<bundles_post_ra>
// kernel: tpu_custom_call.1
= control target key start
LH: loop header
LB: loop body
LE: loop exit
PB: predicated region body
PF: predicated region fallthrough
CT: control target
= control target key end

     0   :  { %11 = vsyncpa [#allocation3], 0  ;;  %s1613_s0 = inlined_call_operand.hbm [shape: f32[2,1,128], index: 0, kind: input, shape index: {}]   ;;  %s1614_s1 = inlined_call_operand.hbm [shape: f32[2,128,128], index: 1, kind: input, shape index: {}]   ;;  %s1615_s2 = inlined_call_operand.hbm [shape: bf16[128,128], index: 2, kind: input, shape index: {}]   ;;  %s1616_s3 = inlined_call_operand.vmem [shape: f32[1,1,128], index: 3, kind: input, shape index: {}]   ;;  %s1617_s4 = inlined_call_operand.hbm [shape: f32[2,128], index: 4, kind: output, shape index: {0}]   ;;  %s1618_s5 = inlined_call_operand.hbm [shape: f32[2,128], index: 5, kind: output, shape index: {1}]  }
   0x1   :  { %12 = vsyncpa [#allocation6], 0 }
   0x2   :  { %13 = vsyncpa [#allocation4], 0 }
   0x3   :  { %14 = vsyncpa [#allocation10], 0  ;;  %s1300_s18 = smov [#allocation5]  }
   0x4   :  { %s32_s19 = sshll.u32 %s1300_s18, 4  ;;  %s33_s19 = int_to_ptr.vmem [resolvable:$true] %s32_s19 }
   0x5   :  { %s1200_s20 = scalar_lea.vmem %s33_s19, 4096  ;;  %p1205_p1 = scmp.lt.s32.totalorder %s33_s19, %s33_s19 }
   0x6   :  { %p1201_p0 = scmp.ne.s32.totalorder %s33_s19, %s1200_s20  ;;  %p1206_p2 = scmp.lt.s32.totalorder %s1200_s20, %s1200_s20 }
   0x8   :  { %p1207_p3 = por %p1206_p2, %p1205_p1 }
   0xa   :  { %p1208_p4 = pnand %p1207_p3, %p1201_p0 }
   0xc   :  { %1211 = shalt.err (!%p1208_p4)
}
   0xd   :  { %s1301_s21 = smov 128   ;;  %s1302_s22 = smov 8  }
   0xe   :  { %38 = dma.hbm_to_vmem [thread:$0]  %s1614_s1, 4096, %s33_s19, [#allocation6], %s1301_s21, %s1301_s21, %s1302_s22  }
   0xf   :  { %s1303_s25 = smov [#allocation2]  }
  0x10   :  { %s20_s26 = sshll.u32 %s1303_s25, 4  ;;  %s21_s26 = int_to_ptr.vmem [resolvable:$true] %s20_s26 }
  0x11   :  { %s1220_s27 = scalar_lea.vmem %s21_s26, 32  ;;  %p1225_p6 = scmp.lt.s32.totalorder %s21_s26, %s21_s26 }
  0x12   :  { %p1221_p5 = scmp.ne.s32.totalorder %s21_s26, %s1220_s27  ;;  %p1226_p7 = scmp.lt.s32.totalorder %s1220_s27, %s1220_s27 }
  0x14   :  { %p1227_p8 = por %p1226_p7, %p1225_p6 }
  0x16   :  { %p1228_p9 = pnand %p1227_p8, %p1221_p5 }
  0x18   :  { %1231 = shalt.err (!%p1228_p9)
}
  0x19   :  { %s1304_s28 = smov 16   ;;  %s1305_s29 = smov 1  }
  0x1a   :  { %26 = dma.hbm_to_vmem [thread:$0]  %s1613_s0, 32, %s21_s26, [#allocation3], %s1304_s28, %s1304_s28, %s1305_s29  }
  0x1b   :  { %s1306_s7 = smov [#allocation7]  }
  0x1c   :  { %s44_s8 = sshll.u32 %s1306_s7, 4  ;;  %s45_s8 = int_to_ptr.vmem [resolvable:$true] %s44_s8 }
  0x1d   :  { %s1240_s1 = scalar_lea.vmem %s45_s8, 1024  ;;  %p1245_p11 = scmp.lt.s32.totalorder %s45_s8, %s45_s8 }
  0x1e   :  { %p1241_p10 = scmp.ne.s32.totalorder %s45_s8, %s1240_s1  ;;  %p1246_p12 = scmp.lt.s32.totalorder %s1240_s1, %s1240_s1 }
  0x20   :  { %p1247_p13 = por %p1246_p12, %p1245_p11 }
  0x22   :  { %p1248_p0 = pnand %p1247_p13, %p1241_p10 }
  0x24   :  { %1251 = shalt.err (!%p1248_p0)
}
  0x25   :  { %s1307_s9 = smov 64   ;;  %s1308_s10 = smov 4  }
  0x26   :  { %50 = dma.hbm_to_vmem [thread:$0]  %s1615_s2, 1024, %s45_s8, [#allocation6], %s1307_s9, %s1307_s9, %s1308_s10  }
  0x27   :  { %1292 = dma.done.wait [#allocation3], 32  }
  0x28   :  { %1293 = vsyncadd [#allocation3], 4294967264 }
  0x29   :  { %1294 = dma.done.wait [#allocation6], 5120  }
  0x2a   :  { %1295 = vsyncadd [#allocation6], 4294962176  ;;  %v1142_v0 = vld [vmem:[#allocation7 + $0x38] sm:$0xff]   ;;  %v1143_v1 = vld [vmem:[#allocation7 + $0x30] sm:$0xff]   ;;  %vm593_vm0 = vcmask 130112   ;;  %vm600_vm1 = vcmask 195712  }
  0x2b   :  { %1067 = vmatprep.subr.bf16.mxu0 %v1142_v0  ;;  %1115 = vmatprep.subr.bf16.mxu1 %v1142_v0  ;;  %v1144_v2 = vld [vmem:[#allocation7 + $0x28] sm:$0xff]   ;;  %v1145_v3 = vld [vmem:[#allocation7 + $0x20] sm:$0xff]   ;;  %v1146_v10 = vld [vmem:[#allocation7 + $0x18] sm:$0xff]   ;;  %vm607_vm2 = vcmask 261312   ;;  %vm614_vm3 = vcmask 326912   ;;  %vm621_vm4 = vcmask 392512  }
  0x2c   :  { %1068 = vmatpush3.bf16.msra.mxu0 %v1142_v0  ;;  %1123 = vmatpush3.bf16.msra.mxu1 %v1142_v0  ;;  %v63_v4 = vld [vmem:[#allocation5] sm:$0xff]  ;;  %v64_v5 = vld [vmem:[#allocation5 + $0x8] sm:$0xff]  ;;  %v1147_v11 = vld [vmem:[#allocation7 + $0x10] sm:$0xff]   ;;  %vm628_vm5 = vcmask 458112   ;;  %vm635_vm6 = vcmask 523712   ;;  %vm642_vm7 = vcmask 589312  }
  0x2d   :  { %1069 = vmatprep.subr.bf16.mxu0 %v1143_v1  ;;  %1116 = vmatprep.subr.bf16.mxu1 %v1143_v1  ;;  %v79_v6 = vld [vmem:[#allocation5 + $0x80] sm:$0xff]  ;;  %v95_v7 = vpack.c.bf16 %v64_v5, %v63_v4  ;;  %v80_v8 = vld [vmem:[#allocation5 + $0x88] sm:$0xff]  ;;  %v1350_v14 = vld [vmem:[#allocation5 + $0x10] sm:$0xff]  ;;  %vm649_vm8 = vcmask 654912   ;;  %vm656_vm9 = vcmask 720512   ;;  %vm663_vm10 = vcmask 786112  }
  0x2e   :  { %v103_v9 = vpack.c.bf16 %v80_v8, %v79_v6  ;;  %v1148_v12 = vld [vmem:[#allocation7 + $0x8] sm:$0xff]   ;;  %v1149_v13 = vld [vmem:[#allocation7] sm:$0xff]   ;;  %v1352_v15 = vld [vmem:[#allocation5 + $0x18] sm:$0xff]  ;;  %vm670_vm11 = vcmask 851712   ;;  %vm677_vm12 = vcmask 917312   ;;  %vm684_vm13 = vcmask 982912  }
  0x2f   :  { %1083 = vmatprep.mubr.bf16.mxu0 %v95_v7  ;;  %v1354_v16 = vld [vmem:[#allocation5 + $0x90] sm:$0xff]  ;;  %v1356_v17 = vld [vmem:[#allocation5 + $0x98] sm:$0xff]  ;;  %v1358_v18 = vld [vmem:[#allocation5 + $0x20] sm:$0xff]  ;;  %v96_v22 = vpack.c.bf16 %v1352_v15, %v1350_v14  ;;  %vm691_vm14 = vcmask 1048512   ;;  %vm772_vm15 = vcmask 1041409  }
  0x30   :  { %1070 = vmatpush3.bf16.msra.mxu0 %v1143_v1  ;;  %1124 = vmatpush3.bf16.msra.mxu1 %v1143_v1  ;;  %v1360_v19 = vld [vmem:[#allocation5 + $0x28] sm:$0xff]  ;;  %v1362_v20 = vld [vmem:[#allocation5 + $0xa0] sm:$0xff]  ;;  %v104_v23 = vpack.c.bf16 %v1356_v17, %v1354_v16  ;;  %v1374_v26 = vld [vmem:[#allocation5 + $0x30] sm:$0xff] }
  0x31   :  { %1071 = vmatprep.subr.bf16.mxu0 %v1144_v2  ;;  %1117 = vmatprep.subr.bf16.mxu1 %v1144_v2  ;;  %v1364_v21 = vld [vmem:[#allocation5 + $0xa8] sm:$0xff]  ;;  %v97_v24 = vpack.c.bf16 %v1360_v19, %v1358_v18  ;;  %v1376_v27 = vld [vmem:[#allocation5 + $0x38] sm:$0xff]  ;;  %v1378_v28 = vld [vmem:[#allocation5 + $0xb0] sm:$0xff] }
  0x32   :  { %1099 = vmatprep.mubr.bf16.mxu1 %v103_v9  ;;  %v105_v25 = vpack.c.bf16 %v1364_v21, %v1362_v20  ;;  %v1380_v29 = vld [vmem:[#allocation5 + $0xb8] sm:$0xff]  ;;  %v1382_v30 = vld [vmem:[#allocation5 + $0x40] sm:$0xff]  ;;  %v1384_v31 = vld [vmem:[#allocation5 + $0x48] sm:$0xff]  ;;  %v98_v34 = vpack.c.bf16 %v1376_v27, %v1374_v26 }
  0x33   :  { %v1386_v32 = vld [vmem:[#allocation5 + $0xc0] sm:$0xff]  ;;  %v1388_v33 = vld [vmem:[#allocation5 + $0xc8] sm:$0xff]  ;;  %v106_v35 = vpack.c.bf16 %v1380_v29, %v1378_v28  ;;  %v99_v36 = vpack.c.bf16 %v1384_v31, %v1382_v30  ;;  %v1398_v38 = vld [vmem:[#allocation5 + $0x50] sm:$0xff] }
  0x34   :  { %1072 = vmatpush3.bf16.msra.mxu0 %v1144_v2  ;;  %1125 = vmatpush3.bf16.msra.mxu1 %v1144_v2  ;;  %v107_v37 = vpack.c.bf16 %v1388_v33, %v1386_v32  ;;  %v1400_v39 = vld [vmem:[#allocation5 + $0x58] sm:$0xff]  ;;  %v1402_v40 = vld [vmem:[#allocation5 + $0xd0] sm:$0xff]  ;;  %v1406_v42 = vld [vmem:[#allocation5 + $0x60] sm:$0xff] }
  0x35   :  { %1073 = vmatprep.subr.bf16.mxu0 %v1145_v3  ;;  %1118 = vmatprep.subr.bf16.mxu1 %v1145_v3  ;;  %v1404_v41 = vld [vmem:[#allocation5 + $0xd8] sm:$0xff]  ;;  %v1408_v43 = vld [vmem:[#allocation5 + $0x68] sm:$0xff]  ;;  %v1410_v44 = vld [vmem:[#allocation5 + $0xe0] sm:$0xff]  ;;  %v100_v46 = vpack.c.bf16 %v1400_v39, %v1398_v38 }
  0x36   :  { %v92_v45 = vld [vmem:[#allocation5 + $0xe8] sm:$0xff]  ;;  %v108_v47 = vpack.c.bf16 %v1404_v41, %v1402_v40  ;;  %v101_v48 = vpack.c.bf16 %v1408_v43, %v1406_v42  ;;  %v1419_v50 = vld [vmem:[#allocation5 + $0x70] sm:$0xff]  ;;  %v1421_v51 = vld [vmem:[#allocation5 + $0x78] sm:$0xff] }
  0x37   :  { %v109_v49 = vpack.c.bf16 %v92_v45, %v1410_v44  ;;  %v1423_v52 = vld [vmem:[#allocation5 + $0xf0] sm:$0xff]  ;;  %v94_v53 = vld [vmem:[#allocation5 + $0xf8] sm:$0xff]  ;;  %v102_v54 = vpack.c.bf16 %v1421_v51, %v1419_v50 }
  0x38   :  { %1074 = vmatpush3.bf16.msra.mxu0 %v1145_v3  ;;  %1126 = vmatpush3.bf16.msra.mxu1 %v1145_v3  ;;  %v110_v55 = vpack.c.bf16 %v94_v53, %v1423_v52  ;;  %v1428_v58 = vld [vmem:[#allocation2] ss:$0 sm:$0xff]  ;;  %v1430_v59 = vld [vmem:[#allocation2 + $0x1] ss:$0 sm:$0xff] }
  0x39   :  { %1075 = vmatprep.subr.bf16.mxu0 %v1146_v10  ;;  %1119 = vmatprep.subr.bf16.mxu1 %v1146_v10 }
  0x3c   :  { %1076 = vmatpush3.bf16.msra.mxu0 %v1146_v10  ;;  %1127 = vmatpush3.bf16.msra.mxu1 %v1146_v10 }
  0x3d   :  { %1077 = vmatprep.subr.bf16.mxu0 %v1147_v11  ;;  %1120 = vmatprep.subr.bf16.mxu1 %v1147_v11 }
  0x40   :  { %1078 = vmatpush3.bf16.msra.mxu0 %v1147_v11  ;;  %1128 = vmatpush3.bf16.msra.mxu1 %v1147_v11 }
  0x41   :  { %1079 = vmatprep.subr.bf16.mxu0 %v1148_v12  ;;  %1121 = vmatprep.subr.bf16.mxu1 %v1148_v12 }
  0x44   :  { %1080 = vmatpush3.bf16.msra.mxu0 %v1148_v12  ;;  %1129 = vmatpush3.bf16.msra.mxu1 %v1148_v12 }
  0x45   :  { %1081 = vmatprep.subr.bf16.mxu0 %v1149_v13  ;;  %1122 = vmatprep.subr.bf16.mxu1 %v1149_v13 }
  0x48   :  { %1082 = vmatpush3.bf16.msra.mxu0 %v1149_v13  ;;  %1130 = vmatpush3.bf16.msra.mxu1 %v1149_v13 }
  0x4b   :  { %1084 = vmatmul.mubr.bf16.vlgmr.msra.gmra.mxu0 %v96_v22  ;;  %1100 = vmatmul.mubr.bf16.vlgmr.msra.gmra.mxu1 %v104_v23 }
  0x4c   :  { %1087 = vmatprep.mubr.bf16.mxu0 %v97_v24  ;;  %1103 = vmatprep.mubr.bf16.mxu1 %v105_v25 }
  0x53   :  { %1088 = vmatmul.mubr.bf16.gmra.mxu0 %v98_v34  ;;  %1104 = vmatmul.mubr.bf16.gmra.mxu1 %v106_v35 }
  0x54   :  { %1091 = vmatprep.mubr.bf16.mxu0 %v99_v36  ;;  %1107 = vmatprep.mubr.bf16.mxu1 %v107_v37 }
  0x5b   :  { %1092 = vmatmul.mubr.bf16.gmra.mxu0 %v100_v46  ;;  %1108 = vmatmul.mubr.bf16.gmra.mxu1 %v108_v47 }
  0x5c   :  { %1095 = vmatprep.mubr.bf16.mxu0 %v101_v48  ;;  %1111 = vmatprep.mubr.bf16.mxu1 %v109_v49 }
  0x63   :  { %1096 = vmatmul.mubr.bf16.gmra.mxu0 %v102_v54  ;;  %1112 = vmatmul.mubr.bf16.gmra.mxu1 %v110_v55 }
 0x10b   :  { %v1085_v56 = vpop.f32.mrf.mxu0  ;;  %v1101_v57 = vpop.f32.mrf.mxu1 }
 0x10c   :  { %v352_v0 = vadd.f32 %v1085_v56, %v1428_v58  ;;  %v368_v1 = vadd.f32 %v1101_v57, %v1430_v59 }
 0x10d   :  { %v209_v60 = vpop.f32.mrf.mxu0  ;;  %v273_v61 = vpop.f32.mrf.mxu1 }
 0x10e   :  { %v350_v4 = vadd.f32 %v1428_v58, %v209_v60  ;;  %v366_v11 = vadd.f32 %v1430_v59, %v273_v61 }
 0x10f   :  { %v1086_v62 = vpop.f32.mrf.mxu0  ;;  %v1102_v63 = vpop.f32.mrf.mxu1 }
 0x110   :  { %v353_v2 = vadd.f32 %v1086_v62, %v1428_v58  ;;  %v369_v3 = vadd.f32 %v1102_v63, %v1430_v59  ;;  %v1451_v63 = vld [vmem:[%s1616_s3] ss:$0 sm:$0xff]  ;;  %s1309_s3 = smov [#allocation9]  }
 0x111   :  { %v212_v5 = vpop.f32.mrf.mxu0  ;;  %v276_v6 = vpop.f32.mrf.mxu1  ;;  %s1018_s13 = sshll.u32 %s1309_s3, 4  ;;  %s1019_s13 = int_to_ptr.vmem [resolvable:$true] %s1018_s13 }
 0x112   :  { %v383_v7 = vpack.c.bf16 %v353_v2, %v352_v0  ;;  %v391_v8 = vpack.c.bf16 %v369_v3, %v368_v1  ;;  %v351_v9 = vadd.f32 %v1428_v58, %v212_v5  ;;  %v367_v10 = vadd.f32 %v1430_v59, %v276_v6  ;;  %s1252_s14 = scalar_lea.vmem %s1019_s13, 32  ;;  %p1257_p2 = scmp.lt.s32.totalorder %s1019_s13, %s1019_s13 }
 0x113   :  { %v1089_v12 = vpop.f32.mrf.mxu0  ;;  %v1105_v13 = vpop.f32.mrf.mxu1  ;;  %p1253_p1 = scmp.ne.s32.totalorder %s1019_s13, %s1252_s14  ;;  %p1258_p3 = scmp.lt.s32.totalorder %s1252_s14, %s1252_s14 }
 0x114   :  { %1150 = vtanh.bf16 %v383_v7  ;;  %v382_v22 = vpack.c.bf16 %v351_v9, %v350_v4  ;;  %v390_v23 = vpack.c.bf16 %v367_v10, %v366_v11  ;;  %v356_v35 = vadd.f32 %v1089_v12, %v1428_v58 }
 0x115   :  { %1152 = vtanh.bf16 %v391_v8  ;;  %v225_v24 = vpop.f32.mrf.mxu0  ;;  %v289_v25 = vpop.f32.mrf.mxu1  ;;  %v372_v45 = vadd.f32 %v1105_v13, %v1430_v59  ;;  %p1259_p4 = por %p1258_p3, %p1257_p2 }
 0x116   :  { %1154 = vtanh.bf16 %v382_v22  ;;  %v354_v55 = vadd.f32 %v1428_v58, %v225_v24  ;;  %v370_v60 = vadd.f32 %v1430_v59, %v289_v25 }
 0x117   :  { %v1090_v34 = vpop.f32.mrf.mxu0  ;;  %v1106_v37 = vpop.f32.mrf.mxu1  ;;  %1156 = vtanh.bf16 %v390_v23  ;;  %p1260_p5 = pnand %p1259_p4, %p1253_p1 }
 0x118   :  { %v357_v36 = vadd.f32 %v1090_v34, %v1428_v58  ;;  %v373_v46 = vadd.f32 %v1106_v37, %v1430_v59 }
 0x119   :  { %v228_v49 = vpop.f32.mrf.mxu0  ;;  %v292_v53 = vpop.f32.mrf.mxu1 }
 0x11a   :  { %v385_v47 = vpack.c.bf16 %v357_v36, %v356_v35  ;;  %v393_v48 = vpack.c.bf16 %v373_v46, %v372_v45  ;;  %v355_v56 = vadd.f32 %v1428_v58, %v228_v49  ;;  %v371_v61 = vadd.f32 %v1430_v59, %v292_v53 }
 0x11b   :  { %v1093_v54 = vpop.f32.mrf.mxu0  ;;  %v1109_v57 = vpop.f32.mrf.mxu1 }
 0x11c   :  { %1158 = vtanh.bf16 %v385_v47  ;;  %v384_v3 = vpack.c.bf16 %v355_v56, %v354_v55  ;;  %v392_v6 = vpack.c.bf16 %v371_v61, %v370_v60  ;;  %v360_v22 = vadd.f32 %v1093_v54, %v1428_v58 }
 0x11d   :  { %1160 = vtanh.bf16 %v393_v48  ;;  %v241_v2 = vpop.f32.mrf.mxu0  ;;  %v305_v5 = vpop.f32.mrf.mxu1  ;;  %v376_v23 = vadd.f32 %v1109_v57, %v1430_v59 }
 0x11e   :  { %1162 = vtanh.bf16 %v384_v3  ;;  %v358_v3 = vadd.f32 %v1428_v58, %v241_v2 }
 0x11f   :  { %v1094_v13 = vpop.f32.mrf.mxu0  ;;  %v1110_v25 = vpop.f32.mrf.mxu1  ;;  %1164 = vtanh.bf16 %v392_v6 }
 0x120   :  { %v361_v24 = vadd.f32 %v1094_v13, %v1428_v58  ;;  %v377_v34 = vadd.f32 %v1110_v25, %v1430_v59 }
 0x121   :  { %v244_v46 = vpop.f32.mrf.mxu0  ;;  %v308_v48 = vpop.f32.mrf.mxu1 }
 0x122   :  { %v1151_v62 = vpop.eup %1150  ;;  %v387_v47 = vpack.c.bf16 %v361_v24, %v360_v22  ;;  %v395_v49 = vpack.c.bf16 %v377_v34, %v376_v23 }
 0x123   :  { %v1153_v0 = vpop.eup %1152  ;;  %v417_v1 = vunpack.c.l.bf16 %v1151_v62  ;;  %v418_v8 = vunpack.c.h.bf16 %v1151_v62  ;;  %v1097_v55 = vpop.f32.mrf.mxu0 }
 0x124   :  { %v433_v4 = vunpack.c.l.bf16 %v1153_v0  ;;  %v1155_v9 = vpop.eup %1154  ;;  %v434_v11 = vunpack.c.h.bf16 %v1153_v0  ;;  %v1113_v61 = vpop.f32.mrf.mxu1  ;;  %v374_v0 = vadd.f32 %v1430_v59, %v305_v5  ;;  %1166 = vtanh.bf16 %v387_v47 }
 0x125   :  { %v455_v7 = vmul.f32 %v1451_v63, %v417_v1  ;;  %v1157_v12 = vpop.eup %1156  ;;  %v456_v35 = vmul.f32 %v1451_v63, %v418_v8  ;;  %v415_v36 = vunpack.c.l.bf16 %v1155_v9  ;;  %v416_v54 = vunpack.c.h.bf16 %v1155_v9  ;;  %v257_v8 = vpop.f32.mrf.mxu0 }
 0x126   :  { %v471_v10 = vmul.f32 %v1451_v63, %v433_v4  ;;  %v472_v37 = vmul.f32 %v1451_v63, %v434_v11  ;;  %v431_v45 = vunpack.c.l.bf16 %v1157_v12  ;;  %v432_v60 = vunpack.c.h.bf16 %v1157_v12  ;;  %v321_v11 = vpop.f32.mrf.mxu1 }
 0x127   :  { %489 = vadd.xlane.f32.xlu0 %v455_v7  ;;  %v453_v53 = vmul.f32 %v1451_v63, %v415_v36  ;;  %v375_v1 = vadd.f32 %v1430_v59, %v308_v48  ;;  %v359_v4 = vadd.f32 %v1428_v58, %v244_v46  ;;  %1168 = vtanh.bf16 %v395_v49  ;;  %v1098_v2 = vpop.f32.mrf.mxu0 }
 0x128   :  { %521 = vadd.xlane.f32.xlu1 %v471_v10  ;;  %v469_v57 = vmul.f32 %v1451_v63, %v431_v45  ;;  %v454_v6 = vmul.f32 %v1451_v63, %v416_v54  ;;  %v470_v9 = vmul.f32 %v1451_v63, %v432_v60  ;;  %v1114_v25 = vpop.f32.mrf.mxu1  ;;  %v364_v36 = vadd.f32 %v1097_v55, %v1428_v58 }
 0x129   :  { %v394_v12 = vpack.c.bf16 %v375_v1, %v374_v0  ;;  %v386_v5 = vpack.c.bf16 %v359_v4, %v358_v3  ;;  %v380_v45 = vadd.f32 %v1113_v61, %v1430_v59  ;;  %v381_v46 = vadd.f32 %v1114_v25, %v1430_v59  ;;  %v260_v48 = vpop.f32.mrf.mxu0 }
 0x12a   :  { %v1159_v56 = vpop.eup %1158  ;;  %v324_v54 = vpop.f32.mrf.mxu1  ;;  %v362_v55 = vadd.f32 %v1428_v58, %v257_v8 }
 0x12b   :  { %491 = vadd.xlane.f32.xlu0 %v456_v35  ;;  %v1161_v62 = vpop.eup %1160  ;;  %v421_v7 = vunpack.c.l.bf16 %v1159_v56  ;;  %v422_v22 = vunpack.c.h.bf16 %v1159_v56  ;;  %1170 = vtanh.bf16 %v394_v12  ;;  %v397_v61 = vpack.c.bf16 %v381_v46, %v380_v45 }
 0x12c   :  { %523 = vadd.xlane.f32.xlu1 %v472_v37  ;;  %v437_v10 = vunpack.c.l.bf16 %v1161_v62  ;;  %v1163_v23 = vpop.eup %1162  ;;  %v438_v34 = vunpack.c.h.bf16 %v1161_v62  ;;  %1172 = vtanh.bf16 %v386_v5  ;;  %v365_v37 = vadd.f32 %v1098_v2, %v1428_v58 }
 0x12d   :  { %v459_v13 = vmul.f32 %v1451_v63, %v421_v7  ;;  %v1165_v35 = vpop.eup %1164  ;;  %v460_v47 = vmul.f32 %v1451_v63, %v422_v22  ;;  %v419_v49 = vunpack.c.l.bf16 %v1163_v23  ;;  %v363_v62 = vadd.f32 %v1428_v58, %v260_v48 }
 0x12e   :  { %v475_v24 = vmul.f32 %v1451_v63, %v437_v10  ;;  %v435_v56 = vunpack.c.l.bf16 %v1165_v35  ;;  %v389_v60 = vpack.c.bf16 %v365_v37, %v364_v36  ;;  %v379_v0 = vadd.f32 %v1430_v59, %v324_v54 }
 0x12f   :  { %485 = vadd.xlane.f32.xlu0 %v453_v53  ;;  %v476_v53 = vmul.f32 %v1451_v63, %v438_v34  ;;  %v457_v1 = vmul.f32 %v1451_v63, %v419_v49  ;;  %v420_v3 = vunpack.c.h.bf16 %v1163_v23  ;;  %v436_v7 = vunpack.c.h.bf16 %v1165_v35 }
 0x130   :  { %517 = vadd.xlane.f32.xlu1 %v469_v57  ;;  %v378_v57 = vadd.f32 %v1430_v59, %v321_v11  ;;  %1174 = vtanh.bf16 %v389_v60  ;;  %v388_v10 = vpack.c.bf16 %v363_v62, %v362_v55 }
 0x131   :  { %1176 = vtanh.bf16 %v397_v61  ;;  %v458_v11 = vmul.f32 %v1451_v63, %v420_v3  ;;  %v474_v12 = vmul.f32 %v1451_v63, %v436_v7 }
 0x132   :  { %v1167_v4 = vpop.eup %1166  ;;  %v396_v8 = vpack.c.bf16 %v379_v0, %v378_v57  ;;  %1178 = vtanh.bf16 %v388_v10 }
 0x133   :  { %487 = vadd.xlane.f32.xlu0 %v454_v6  ;;  %v473_v6 = vmul.f32 %v1451_v63, %v435_v56  ;;  %v425_v58 = vunpack.c.l.bf16 %v1167_v4  ;;  %v426_v2 = vunpack.c.h.bf16 %v1167_v4 }
 0x134   :  { %519 = vadd.xlane.f32.xlu1 %v470_v9  ;;  %1180 = vtanh.bf16 %v396_v8 }
 0x135   :  { %v1169_v9 = vpop.eup %1168  ;;  %v464_v25 = vmul.f32 %v1451_v63, %v426_v2 }
 0x136   :  { %v441_v59 = vunpack.c.l.bf16 %v1169_v9 }
 0x137   :  { %497 = vadd.xlane.f32.xlu0 %v459_v13  ;;  %v463_v13 = vmul.f32 %v1451_v63, %v425_v58 }
 0x138   :  { %529 = vadd.xlane.f32.xlu1 %v475_v24  ;;  %v479_v23 = vmul.f32 %v1451_v63, %v441_v59  ;;  %v442_v24 = vunpack.c.h.bf16 %v1169_v9 }
 0x139   :  { %v1171_v5 = vpop.eup %1170 }
 0x13a   :  { %v1173_v22 = vpop.eup %1172  ;;  %v480_v35 = vmul.f32 %v1451_v63, %v442_v24  ;;  %v439_v36 = vunpack.c.l.bf16 %v1171_v5  ;;  %v440_v48 = vunpack.c.h.bf16 %v1171_v5 }
 0x13b   :  { %499 = vadd.xlane.f32.xlu0 %v460_v47  ;;  %v423_v34 = vunpack.c.l.bf16 %v1173_v22  ;;  %v424_v45 = vunpack.c.h.bf16 %v1173_v22 }
 0x13c   :  { %531 = vadd.xlane.f32.xlu1 %v476_v53  ;;  %v477_v47 = vmul.f32 %v1451_v63, %v439_v36  ;;  %v478_v57 = vmul.f32 %v1451_v63, %v440_v48 }
 0x13d   :  { %v461_v37 = vmul.f32 %v1451_v63, %v423_v34  ;;  %v462_v53 = vmul.f32 %v1451_v63, %v424_v45 }
 0x13e   :  { %v1175_v46 = vpop.eup %1174 }
 0x13f   :  { %493 = vadd.xlane.f32.xlu0 %v457_v1  ;;  %v1177_v49 = vpop.eup %1176  ;;  %v429_v54 = vunpack.c.l.bf16 %v1175_v46  ;;  %v430_v10 = vunpack.c.h.bf16 %v1175_v46 }
 0x140   :  { %525 = vadd.xlane.f32.xlu1 %v473_v6  ;;  %v1179_v56 = vpop.eup %1178  ;;  %v445_v55 = vunpack.c.l.bf16 %v1177_v49 }
 0x141   :  { %v467_v62 = vmul.f32 %v1451_v63, %v429_v54  ;;  %v427_v61 = vunpack.c.l.bf16 %v1179_v56  ;;  %v428_v4 = vunpack.c.h.bf16 %v1179_v56  ;;  %v468_v58 = vmul.f32 %v1451_v63, %v430_v10 }
 0x142   :  { %v1181_v60 = vpop.eup %1180  ;;  %v483_v0 = vmul.f32 %v1451_v63, %v445_v55 }
 0x143   :  { %495 = vadd.xlane.f32.xlu0 %v458_v11  ;;  %v443_v1 = vunpack.c.l.bf16 %v1181_v60  ;;  %v465_v3 = vmul.f32 %v1451_v63, %v427_v61  ;;  %v444_v7 = vunpack.c.h.bf16 %v1181_v60  ;;  %v466_v9 = vmul.f32 %v1451_v63, %v428_v4 }
 0x144   :  { %527 = vadd.xlane.f32.xlu1 %v474_v12  ;;  %v446_v11 = vunpack.c.h.bf16 %v1177_v49 }
 0x145   :  { %v481_v6 = vmul.f32 %v1451_v63, %v443_v1  ;;  %v482_v8 = vmul.f32 %v1451_v63, %v444_v7 }
 0x146   :  { %v484_v12 = vmul.f32 %v1451_v63, %v446_v11 }
 0x147   :  { %505 = vadd.xlane.f32.xlu0 %v463_v13 }
 0x148   :  { %537 = vadd.xlane.f32.xlu1 %v479_v23 }
 0x14b   :  { %507 = vadd.xlane.f32.xlu0 %v464_v25 }
 0x14c   :  { %539 = vadd.xlane.f32.xlu1 %v480_v35  ;;  %v549_v35 = vlaneseq }
 0x14e   :  { %v1509_v45 = vand.u32 127, %v549_v35  ;;  %v1514_v48 = vshrl.u32 %v549_v35, 7 }
 0x14f   :  { %501 = vadd.xlane.f32.xlu0 %v461_v37 }
 0x150   :  { %533 = vadd.xlane.f32.xlu1 %v477_v47  ;;  %v588_v46 = vadd.s32 4294967288, %v1509_v45  ;;  %v595_v54 = vadd.s32 4294967280, %v1509_v45  ;;  %v609_v60 = vadd.s32 4294967264, %v1509_v45  ;;  %v623_v35 = vadd.s32 4294967248, %v1509_v45 }
 0x152   :  { %v598_v1 = vsub.s32 %v595_v54, %v1514_v48  ;;  %v612_v10 = vsub.s32 %v609_v60, %v1514_v48  ;;  %v644_v60 = vadd.s32 4294967224, %v1509_v45 }
 0x153   :  { %503 = vadd.xlane.f32.xlu0 %v462_v53  ;;  %v591_v53 = vsub.s32 %v588_v46, %v1514_v48 }
 0x154   :  { %535 = vadd.xlane.f32.xlu1 %v478_v57  ;;  %v586_v57 = vsub.s32 %v1509_v45, %v1514_v48 }
 0x157   :  { %513 = vadd.xlane.f32.xlu0 %v467_v62  ;;  %v602_v62 = vadd.s32 4294967272, %v1509_v45 }
 0x158   :  { %545 = vadd.xlane.f32.xlu1 %v483_v0  ;;  %v616_v0 = vadd.s32 4294967256, %v1509_v45 }
 0x15b   :  { %509 = vadd.xlane.f32.xlu0 %v465_v3 }
 0x15c   :  { %541 = vadd.xlane.f32.xlu1 %v481_v6 }
 0x15f   :  { %511 = vadd.xlane.f32.xlu0 %v466_v9 }
 0x160   :  { %543 = vadd.xlane.f32.xlu1 %v482_v8  ;;  %v605_v8 = vsub.s32 %v602_v62, %v1514_v48 }
 0x163   :  { %515 = vadd.xlane.f32.xlu0 %v468_v58  ;;  %v619_v58 = vsub.s32 %v616_v0, %v1514_v48 }
 0x164   :  { %547 = vadd.xlane.f32.xlu1 %v484_v12 }
 0x1b0   :  { %v490_v59 = vpop.xlane.xlu0 %489 }
 0x1b1   :  { %v522_v5 = vpop.xlane.xlu1 %521  ;;  %v599_v12 = vrot.slane %v490_v59, %v598_v1 }
 0x1b4   :  { %v492_v13 = vpop.xlane.xlu0 %491 }
 0x1b5   :  { %v1501_v2 = vpop.xlane.xlu1 %523  ;;  %v606_v59 = vrot.slane %v492_v13, %v605_v8 }
 0x1b8   :  { %v486_v22 = vpop.xlane.xlu0 %485 }
 0x1b9   :  { %v518_v23 = vpop.xlane.xlu1 %517  ;;  %v587_v6 = vrot.slane %v486_v22, %v586_v57  ;;  %v630_v22 = vadd.s32 4294967240, %v1509_v45 }
 0x1ba   :  { %v696_v9 = vrot.slane %v518_v23, %v586_v57  ;;  %v637_v57 = vadd.s32 4294967232, %v1509_v45 }
 0x1bc   :  { %v488_v24 = vpop.xlane.xlu0 %487 }
 0x1bd   :  { %v520_v25 = vpop.xlane.xlu1 %519  ;;  %v592_v61 = vrot.slane %v488_v24, %v591_v53 }
 0x1be   :  { %v700_v3 = vrot.slane %v520_v25, %v591_v53  ;;  %v705_v25 = vrot.slane %v522_v5, %v598_v1  ;;  %v710_v5 = vrot.slane %v1501_v2, %v605_v8  ;;  %v626_v1 = vsub.s32 %v623_v35, %v1514_v48 }
 0x1bf   :  { %v594_v11 = vsel %vm593_vm0, %v592_v61, %v587_v6  ;;  %v651_v8 = vadd.s32 4294967216, %v1509_v45 }
 0x1c0   :  { %v1503_v34 = vpop.xlane.xlu0 %497  ;;  %v701_v24 = vsel %vm593_vm0, %v700_v3, %v696_v9  ;;  %v601_v53 = vsel %vm600_vm1, %v599_v12, %v594_v11  ;;  %vm551_vm0 = vcmp.lt.s32.totalorder %v1509_v45, 8 }
 0x1c1   :  { %v1505_v36 = vpop.xlane.xlu1 %529  ;;  %v706_v62 = vsel %vm600_vm1, %v705_v25, %v701_v24  ;;  %v608_v9 = vsel %vm607_vm2, %v606_v59, %v601_v53  ;;  %v640_v24 = vsub.s32 %v637_v57, %v1514_v48  ;;  %v658_v25 = vadd.s32 4294967208, %v1509_v45 }
 0x1c2   :  { %v711_v12 = vsel %vm607_vm2, %v710_v5, %v706_v62  ;;  %v725_v35 = vrot.slane %v1505_v36, %v626_v1  ;;  %v665_v57 = vadd.s32 4294967200, %v1509_v45  ;;  %v654_v36 = vsub.s32 %v651_v8, %v1514_v48 }
 0x1c3   :  { %v686_v8 = vadd.s32 4294967176, %v1509_v45  ;;  %vm776_vm1 = vcmask 1041408  }
 0x1c4   :  { %v1507_v37 = vpop.xlane.xlu0 %499 }
 0x1c5   :  { %v1511_v63 = vpop.xlane.xlu1 %531 }
 0x1c8   :  { %v494_v47 = vpop.xlane.xlu0 %493 }
 0x1c9   :  { %v526_v49 = vpop.xlane.xlu1 %525  ;;  %v613_v54 = vrot.slane %v494_v47, %v612_v10  ;;  %v633_v47 = vsub.s32 %v630_v22, %v1514_v48 }
 0x1ca   :  { %v715_v61 = vrot.slane %v526_v49, %v612_v10 }
 0x1cb   :  { %v615_v13 = vsel %vm614_vm3, %v613_v54, %v608_v9 }
 0x1cc   :  { %v496_v56 = vpop.xlane.xlu0 %495  ;;  %v716_v49 = vsel %vm614_vm3, %v715_v61, %v711_v12  ;;  %v730_v61 = vrot.slane %v1511_v63, %v633_v47  ;;  %v668_v12 = vsub.s32 %v665_v57, %v1514_v48 }
 0x1cd   :  { %v528_v55 = vpop.xlane.xlu1 %527  ;;  %v620_v0 = vrot.slane %v496_v56, %v619_v58  ;;  %v647_v56 = vsub.s32 %v644_v60, %v1514_v48  ;;  %v634_v60 = vrot.slane %v1507_v37, %v633_v47 }
 0x1ce   :  { %v720_v3 = vrot.slane %v528_v55, %v619_v58  ;;  %v627_v55 = vrot.slane %v1503_v34, %v626_v1 }
 0x1cf   :  { %v622_v2 = vsel %vm621_vm4, %v620_v0, %v615_v13 }
 0x1d0   :  { %v1524_v4 = vpop.xlane.xlu0 %505  ;;  %v721_v10 = vsel %vm621_vm4, %v720_v3, %v716_v49  ;;  %v629_v53 = vsel %vm628_vm5, %v627_v55, %v622_v2  ;;  %v679_v49 = vadd.s32 4294967184, %v1509_v45 }
 0x1d1   :  { %v1526_v7 = vpop.xlane.xlu1 %537  ;;  %v726_v34 = vsel %vm628_vm5, %v725_v35, %v721_v10  ;;  %v636_v1 = vsel %vm635_vm6, %v634_v60, %v629_v53  ;;  %v655_v13 = vrot.slane %v1524_v4, %v654_v36 }
 0x1d2   :  { %v731_v9 = vsel %vm635_vm6, %v730_v61, %v726_v34 }
 0x1d4   :  { %v1532_v46 = vpop.xlane.xlu0 %507 }
 0x1d5   :  { %v1535_v23 = vpop.xlane.xlu1 %539 }
 0x1d8   :  { %v502_v6 = vpop.xlane.xlu0 %501 }
 0x1d9   :  { %v534_v11 = vpop.xlane.xlu1 %533  ;;  %v641_v54 = vrot.slane %v502_v6, %v640_v24  ;;  %v672_v6 = vadd.s32 4294967192, %v1509_v45  ;;  %v791_v45 = vsub.s32 0, %v1514_v48 }
 0x1da   :  { %v735_v59 = vrot.slane %v534_v11, %v640_v24  ;;  %v661_v11 = vsub.s32 %v658_v25, %v1514_v48 }
 0x1db   :  { %v643_v37 = vsel %vm642_vm7, %v641_v54, %v636_v1  ;;  %v675_v10 = vsub.s32 %v672_v6, %v1514_v48  ;;  %v682_v54 = vsub.s32 %v679_v49, %v1514_v48 }
 0x1dc   :  { %v504_v58 = vpop.xlane.xlu0 %503  ;;  %v736_v63 = vsel %vm642_vm7, %v735_v59, %v731_v9  ;;  %v662_v25 = vrot.slane %v1532_v46, %v661_v11  ;;  %v750_v4 = vrot.slane %v1535_v23, %v661_v11  ;;  %v689_v59 = vsub.s32 %v686_v8, %v1514_v48 }
 0x1dd   :  { %v536_v22 = vpop.xlane.xlu1 %535  ;;  %v648_v62 = vrot.slane %v504_v58, %v647_v56 }
 0x1de   :  { %v740_v0 = vrot.slane %v536_v22, %v647_v56  ;;  %v745_v56 = vrot.slane %v1526_v7, %v654_v36 }
 0x1df   :  { %v650_v47 = vsel %vm649_vm8, %v648_v62, %v643_v37 }
 0x1e0   :  { %v514_v5 = vpop.xlane.xlu0 %513  ;;  %v741_v24 = vsel %vm649_vm8, %v740_v0, %v736_v63  ;;  %v657_v58 = vsel %vm656_vm9, %v655_v13, %v650_v47 }
 0x1e1   :  { %v546_v3 = vpop.xlane.xlu1 %545  ;;  %v746_v22 = vsel %vm656_vm9, %v745_v56, %v741_v24  ;;  %v664_v7 = vsel %vm663_vm10, %v662_v25, %v657_v58  ;;  %v683_v46 = vrot.slane %v514_v5, %v682_v54 }
 0x1e2   :  { %v751_v62 = vsel %vm663_vm10, %v750_v4, %v746_v22  ;;  %v765_v23 = vrot.slane %v546_v3, %v682_v54  ;;  %v858_v22 = vsub.s32 1, %v1514_v48 }
 0x1e4   :  { %v510_v2 = vpop.xlane.xlu0 %509 }
 0x1e5   :  { %v542_v55 = vpop.xlane.xlu1 %541  ;;  %v669_v35 = vrot.slane %v510_v2, %v668_v12 }
 0x1e6   :  { %v755_v53 = vrot.slane %v542_v55, %v668_v12 }
 0x1e7   :  { %v671_v61 = vsel %vm670_vm11, %v669_v35, %v664_v7 }
 0x1e8   :  { %v512_v57 = vpop.xlane.xlu0 %511  ;;  %v756_v0 = vsel %vm670_vm11, %v755_v53, %v751_v62 }
 0x1e9   :  { %v544_v60 = vpop.xlane.xlu1 %543  ;;  %v676_v34 = vrot.slane %v512_v57, %v675_v10 }
 0x1ea   :  { %v760_v36 = vrot.slane %v544_v60, %v675_v10 }
 0x1eb   :  { %v678_v1 = vsel %vm677_vm12, %v676_v34, %v671_v61 }
 0x1ec   :  { %v761_v6 = vsel %vm677_vm12, %v760_v36, %v756_v0  ;;  %v516_v9 = vpop.xlane.xlu0 %515  ;;  %v685_v63 = vsel %vm684_vm13, %v683_v46, %v678_v1 }
 0x1ed   :  { %v548_v37 = vpop.xlane.xlu1 %547  ;;  %v690_v12 = vrot.slane %v516_v9, %v689_v59  ;;  %v766_v13 = vsel %vm684_vm13, %v765_v23, %v761_v6 }
 0x1ee   :  { %v770_v11 = vrot.slane %v548_v37, %v689_v59 }
 0x1ef   :  { %v692_v47 = vsel %vm691_vm14, %v690_v12, %v685_v63 }
 0x1f0   :  { %v771_v24 = vsel %vm691_vm14, %v770_v11, %v766_v13 }
 0x1f1   :  { %v773_v49 = vsel %vm772_vm15, %v771_v24, %v692_v47 }
 0x1f2   :  { %v775_v2 = vsel %vm551_vm0, %v773_v49, -1e+30 }
 0x1f3   :  { %v777_v56 = vsel %vm776_vm1, %v775_v2, -inf }
 0x1f4   :  { %778 = vmax.xlane.f32.xlu0 %v777_v56 }
 0x27d   :  { %v779_v5 = vpop.xlane.xlu0 %778 }
 0x27e   :  { %v780_v55 = vsub.f32 %v775_v2, %v779_v5 }
 0x280   :  { %v781_v10 = vmul.f32 1.442695, %v780_v55 }
 0x282   :  { %1182 = vpow2.f32 %v781_v10 }
 0x28f   :  { %v1183_v3 = vpop.eup %1182 }
 0x290   :  { %v783_v8 = vsel %vm776_vm1, %v1183_v3, 0.0 }
 0x291   :  { %784 = vadd.xlane.f32.xlu1 %v783_v8 }
 0x31a   :  { %v785_v58 = vpop.xlane.xlu1 %784 }
 0x31b   :  { %1184 = vrcp.f32 %v785_v58 }
 0x328   :  { %v1185_v35 = vpop.eup %1184 }
 0x329   :  { %v787_v25 = vmul.f32 %v1185_v35, %v1183_v3 }
 0x32b   :  { %v792_v53 = vrot.slane %v787_v25, %v791_v45  ;;  %788 = vst [vmem:[#allocation9] sm:$0x3] %v787_v25  ;;  %v859_v4 = vrot.slane %v787_v25, %v858_v22 }
 0x32d   :  { %798 = vbcast.lane.b32.xlu1 %v792_v53, 264  ;;  %794 = vbcast.lane.b32.xlu0 %v792_v53, 256 }
 0x331   :  { %861 = vbcast.lane.b32.xlu1 %v859_v4, 256  ;;  %802 = vbcast.lane.b32.xlu0 %v792_v53, 272 }
 0x335   :  { %865 = vbcast.lane.b32.xlu1 %v859_v4, 264  ;;  %806 = vbcast.lane.b32.xlu0 %v792_v53, 280 }
 0x339   :  { %869 = vbcast.lane.b32.xlu1 %v859_v4, 272  ;;  %810 = vbcast.lane.b32.xlu0 %v792_v53, 288 }
 0x33d   :  { %873 = vbcast.lane.b32.xlu1 %v859_v4, 280  ;;  %814 = vbcast.lane.b32.xlu0 %v792_v53, 296 }
 0x341   :  { %877 = vbcast.lane.b32.xlu1 %v859_v4, 288  ;;  %818 = vbcast.lane.b32.xlu0 %v792_v53, 304 }
 0x345   :  { %881 = vbcast.lane.b32.xlu1 %v859_v4, 296  ;;  %822 = vbcast.lane.b32.xlu0 %v792_v53, 312 }
 0x349   :  { %885 = vbcast.lane.b32.xlu1 %v859_v4, 304  ;;  %826 = vbcast.lane.b32.xlu0 %v792_v53, 320 }
 0x34d   :  { %889 = vbcast.lane.b32.xlu1 %v859_v4, 312  ;;  %830 = vbcast.lane.b32.xlu0 %v792_v53, 328 }
 0x351   :  { %893 = vbcast.lane.b32.xlu1 %v859_v4, 320  ;;  %834 = vbcast.lane.b32.xlu0 %v792_v53, 336 }
 0x355   :  { %897 = vbcast.lane.b32.xlu1 %v859_v4, 328  ;;  %838 = vbcast.lane.b32.xlu0 %v792_v53, 344 }
 0x359   :  { %901 = vbcast.lane.b32.xlu1 %v859_v4, 336  ;;  %842 = vbcast.lane.b32.xlu0 %v792_v53, 352 }
 0x35d   :  { %905 = vbcast.lane.b32.xlu1 %v859_v4, 344  ;;  %846 = vbcast.lane.b32.xlu0 %v792_v53, 360 }
 0x361   :  { %909 = vbcast.lane.b32.xlu1 %v859_v4, 352  ;;  %850 = vbcast.lane.b32.xlu0 %v792_v53, 368 }
 0x365   :  { %913 = vbcast.lane.b32.xlu1 %v859_v4, 360  ;;  %854 = vbcast.lane.b32.xlu0 %v792_v53, 376 }
 0x369   :  { %917 = vbcast.lane.b32.xlu1 %v859_v4, 368 }
 0x36d   :  { %921 = vbcast.lane.b32.xlu1 %v859_v4, 376 }
 0x36e   :  { %1263 = shalt.err (!%p1260_p5)
}
 0x36f   :  { %1021 = dma.vmem_to_hbm [thread:$0]  %s1019_s13, 32, %s1618_s5, [#allocation10]   ;;  %v1186_v9 = vld [vmem:[#allocation5 + $0x8] sm:$0xff]  ;;  %v1187_v37 = vld [vmem:[#allocation5] sm:$0xff] }
 0x370   :  { %v1188_v55 = vld [vmem:[#allocation5 + $0x88] sm:$0xff]  ;;  %v1189_v35 = vld [vmem:[#allocation5 + $0x80] sm:$0xff]  ;;  %s1310_s5 = smov [#allocation8]  }
 0x371   :  { %s1008_s17 = sshll.u32 %s1310_s5, 4  ;;  %s1009_s17 = int_to_ptr.vmem [resolvable:$true] %s1008_s17 }
 0x372   :  { %s1272_s18 = scalar_lea.vmem %s1009_s17, 32  ;;  %p1277_p7 = scmp.lt.s32.totalorder %s1009_s17, %s1009_s17 }
 0x373   :  { %p1273_p6 = scmp.ne.s32.totalorder %s1009_s17, %s1272_s18  ;;  %p1278_p8 = scmp.lt.s32.totalorder %s1272_s18, %s1272_s18 }
 0x375   :  { %p1279_p9 = por %p1278_p8, %p1277_p7 }
 0x377   :  { %p1280_p10 = pnand %p1279_p9, %p1273_p6 }
 0x39f   :  { %v799_v48 = vpop.permute.xlu1 %798  ;;  %v795_v54 = vpop.permute.xlu0 %794 }
 0x3a0   :  { %v924_v23 = vmul.f32 %v1186_v9, %v799_v48  ;;  %v923_v12 = vmul.f32 %v1187_v37, %v795_v54 }
 0x3a2   :  { %v955_v13 = vadd.f32 %v924_v23, %v923_v12 }
 0x3a3   :  { %v862_v57 = vpop.permute.xlu1 %861  ;;  %v803_v7 = vpop.permute.xlu0 %802 }
 0x3a4   :  { %v925_v47 = vmul.f32 %v803_v7, %v1350_v14  ;;  %v939_v25 = vmul.f32 %v1189_v35, %v862_v57 }
 0x3a6   :  { %v956_v56 = vadd.f32 %v955_v13, %v925_v47 }
 0x3a7   :  { %v866_v60 = vpop.permute.xlu1 %865  ;;  %v807_v34 = vpop.permute.xlu0 %806 }
 0x3a8   :  { %v926_v24 = vmul.f32 %v807_v34, %v1352_v15  ;;  %v940_v10 = vmul.f32 %v1188_v55, %v866_v60 }
 0x3aa   :  { %v957_v3 = vadd.f32 %v956_v56, %v926_v24  ;;  %v976_v15 = vadd.f32 %v940_v10, %v939_v25 }
 0x3ab   :  { %v870_v59 = vpop.permute.xlu1 %869  ;;  %v811_v62 = vpop.permute.xlu0 %810 }
 0x3ac   :  { %v927_v5 = vmul.f32 %v811_v62, %v1358_v18  ;;  %v941_v22 = vmul.f32 %v870_v59, %v1354_v16 }
 0x3ae   :  { %v958_v14 = vadd.f32 %v957_v3, %v927_v5  ;;  %v977_v60 = vadd.f32 %v976_v15, %v941_v22  ;;  %v1191_v15 = vld [vmem:[#allocation5 + $0xf8] sm:$0xff] }
 0x3af   :  { %v874_v61 = vpop.permute.xlu1 %873  ;;  %v815_v36 = vpop.permute.xlu0 %814 }
 0x3b0   :  { %v928_v8 = vmul.f32 %v815_v36, %v1360_v19  ;;  %v942_v4 = vmul.f32 %v874_v61, %v1356_v17 }
 0x3b2   :  { %v959_v48 = vadd.f32 %v958_v14, %v928_v8  ;;  %v978_v57 = vadd.f32 %v977_v60, %v942_v4  ;;  %v1190_v8 = vld [vmem:[#allocation5 + $0xe8] sm:$0xff] }
 0x3b3   :  { %v878_v0 = vpop.permute.xlu1 %877  ;;  %v819_v1 = vpop.permute.xlu0 %818 }
 0x3b4   :  { %v929_v53 = vmul.f32 %v819_v1, %v1374_v26  ;;  %v943_v19 = vmul.f32 %v878_v0, %v1362_v20 }
 0x3b6   :  { %v960_v34 = vadd.f32 %v959_v48, %v929_v53  ;;  %v979_v17 = vadd.f32 %v978_v57, %v943_v19 }
 0x3b7   :  { %v882_v46 = vpop.permute.xlu1 %881  ;;  %v823_v6 = vpop.permute.xlu0 %822 }
 0x3b8   :  { %v930_v18 = vmul.f32 %v823_v6, %v1376_v27  ;;  %v944_v16 = vmul.f32 %v882_v46, %v1364_v21 }
 0x3ba   :  { %v961_v59 = vadd.f32 %v960_v34, %v930_v18  ;;  %v980_v9 = vadd.f32 %v979_v17, %v944_v16 }
 0x3bb   :  { %v886_v11 = vpop.permute.xlu1 %885  ;;  %v827_v63 = vpop.permute.xlu0 %826 }
 0x3bc   :  { %v931_v62 = vmul.f32 %v827_v63, %v1382_v30  ;;  %v945_v61 = vmul.f32 %v886_v11, %v1378_v28 }
 0x3be   :  { %v962_v27 = vadd.f32 %v961_v59, %v931_v62  ;;  %v981_v21 = vadd.f32 %v980_v9, %v945_v61 }
 0x3bf   :  { %v890_v49 = vpop.permute.xlu1 %889  ;;  %v831_v2 = vpop.permute.xlu0 %830 }
 0x3c0   :  { %v932_v26 = vmul.f32 %v831_v2, %v1384_v31  ;;  %v946_v20 = vmul.f32 %v890_v49, %v1380_v29 }
 0x3c2   :  { %v963_v0 = vadd.f32 %v962_v27, %v932_v26  ;;  %v982_v63 = vadd.f32 %v981_v21, %v946_v20 }
 0x3c3   :  { %v894_v58 = vpop.permute.xlu1 %893  ;;  %v835_v45 = vpop.permute.xlu0 %834 }
 0x3c4   :  { %v933_v6 = vmul.f32 %v835_v45, %v1398_v38  ;;  %v947_v46 = vmul.f32 %v894_v58, %v1386_v32 }
 0x3c6   :  { %v964_v31 = vadd.f32 %v963_v0, %v933_v6  ;;  %v983_v29 = vadd.f32 %v982_v63, %v947_v46 }
 0x3c7   :  { %v898_v54 = vpop.permute.xlu1 %897  ;;  %v839_v7 = vpop.permute.xlu0 %838 }
 0x3c8   :  { %v934_v30 = vmul.f32 %v839_v7, %v1400_v39  ;;  %v948_v28 = vmul.f32 %v898_v54, %v1388_v33 }
 0x3ca   :  { %v965_v11 = vadd.f32 %v964_v31, %v934_v30  ;;  %v984_v2 = vadd.f32 %v983_v29, %v948_v28 }
 0x3cb   :  { %v902_v36 = vpop.permute.xlu1 %901  ;;  %v843_v1 = vpop.permute.xlu0 %842 }
 0x3cc   :  { %v935_v12 = vmul.f32 %v843_v1, %v1406_v42  ;;  %v949_v24 = vmul.f32 %v902_v36, %v1402_v40 }
 0x3ce   :  { %v966_v39 = vadd.f32 %v965_v11, %v935_v12  ;;  %v985_v55 = vadd.f32 %v984_v2, %v949_v24 }
 0x3cf   :  { %v906_v23 = vpop.permute.xlu1 %905  ;;  %v847_v37 = vpop.permute.xlu0 %846 }
 0x3d0   :  { %v936_v38 = vmul.f32 %v847_v37, %v1408_v43  ;;  %v950_v32 = vmul.f32 %v906_v23, %v1404_v41 }
 0x3d2   :  { %v967_v56 = vadd.f32 %v966_v39, %v936_v38  ;;  %v986_v3 = vadd.f32 %v985_v55, %v950_v32 }
 0x3d3   :  { %v910_v47 = vpop.permute.xlu1 %909  ;;  %v851_v13 = vpop.permute.xlu0 %850 }
 0x3d4   :  { %v937_v49 = vmul.f32 %v851_v13, %v1419_v50  ;;  %v951_v33 = vmul.f32 %v910_v47, %v1410_v44 }
 0x3d6   :  { %v968_v10 = vadd.f32 %v967_v56, %v937_v49  ;;  %v987_v35 = vadd.f32 %v986_v3, %v951_v33 }
 0x3d7   :  { %v914_v5 = vpop.permute.xlu1 %913  ;;  %v855_v42 = vpop.permute.xlu0 %854 }
 0x3d8   :  { %v938_v43 = vmul.f32 %v855_v42, %v1421_v51  ;;  %v952_v58 = vmul.f32 %v1190_v8, %v914_v5 }
 0x3da   :  { %v969_v45 = vadd.f32 %v968_v10, %v938_v43  ;;  %v988_v22 = vadd.f32 %v987_v35, %v952_v58 }
 0x3db   :  { %v918_v40 = vpop.permute.xlu1 %917 }
 0x3dc   :  { %v970_v25 = vrot.slane %v969_v45, 4  ;;  %v953_v50 = vmul.f32 %v918_v40, %v1423_v52 }
 0x3de   :  { %v971_v41 = vadd.f32 %v970_v25, %v969_v45  ;;  %v989_v53 = vadd.f32 %v988_v22, %v953_v50 }
 0x3df   :  { %v922_v14 = vpop.permute.xlu1 %921 }
 0x3e0   :  { %v954_v4 = vmul.f32 %v1191_v15, %v922_v14  ;;  %v972_v48 = vrot.slane %v971_v41, 2 }
 0x3e2   :  { %v990_v44 = vadd.f32 %v989_v53, %v954_v4  ;;  %v973_v54 = vadd.f32 %v972_v48, %v971_v41 }
 0x3e4   :  { %v991_v18 = vrot.slane %v990_v44, 4  ;;  %v974_v60 = vrot.slane %v973_v54, 1 }
 0x3e6   :  { %v992_v51 = vadd.f32 %v991_v18, %v990_v44  ;;  %v975_v62 = vadd.f32 %v974_v60, %v973_v54 }
 0x3e8   :  { %v993_v7 = vrot.slane %v992_v51, 2 }
 0x3ea   :  { %v994_v19 = vadd.f32 %v993_v7, %v992_v51 }
 0x3ec   :  { %v995_v34 = vrot.slane %v994_v19, 1 }
 0x3ee   :  { %v996_v57 = vadd.f32 %v995_v34, %v994_v19 }
 0x3f0   :  { %v999_v52 = vsel %vm772_vm15, %v996_v57, %v975_v62 }
 0x3f1   :  { %1001 = vst [vmem:[#allocation8] sm:$0x3] %v999_v52 }
 0x3f2   :  { %1283 = shalt.err (!%p1280_p10)
}
 0x3f3   :  { %1011 = dma.vmem_to_hbm [thread:$0]  %s1009_s17, 32, %s1617_s4, [#allocation4]  }
 0x3f4   :  { %1296 = dma.done.wait [#allocation4], 32  }
 0x3f5   :  { %1297 = vsyncadd [#allocation4], 4294967264 }
 0x3f6   :  { %1298 = dma.done.wait [#allocation10], 32  }
 0x3f7   :  { %1299 = vsyncadd [#allocation10], 4294967264 }
 0x3f8   :  { %1028 = vsyncpa [#allocation3], 1 }
 0x3f9   :  { %1029 = vsyncpa [#allocation6], 1 }
 0x3fa   :  { %1030 = vsyncpa [#allocation4], 1 }
 0x3fb   :  { %1031 = vsyncpa [#allocation10], 1 }

</bundles_post_ra>
